<compile_context>
chip_gen: v7x
topology: tpu7x:2x2x1
jax: 0.10.0
libtpu: 0.0.40
codegen_flags: <defaults>
</compile_context>

<pallas_src>
import functools

import jax
import jax.numpy as jnp
from jax import lax
from jax.experimental import pallas as pl
from jax.experimental.pallas import tpu as pltpu


_BN_EPS = 1e-5


@functools.lru_cache(maxsize=None)
def _vmem_budget_bytes():
    """Chip-aware scoped-VMEM budget (v5e/v6e: 128 MiB phys, v7x: 64 MiB)."""
    try:
        cap = int(pltpu.get_tpu_info().vmem_capacity_bytes)
    except Exception:  # non-TPU backend / old runtime: conservative default
        cap = 64 * 1024 * 1024
    return int(cap * 0.7)


def _compiler_params(dimension_semantics=None):
    return pltpu.CompilerParams(
        dimension_semantics=dimension_semantics,
        vmem_limit_bytes=_vmem_budget_bytes(),
    )


def _pick_tile(dim, target, quantum=128):
    """Largest multiple of `quantum` <= target that divides `dim` (else dim)."""
    if dim <= target:
        return dim
    t = (min(target, dim) // quantum) * quantum
    while t >= quantum:
        if dim % t == 0:
            return t
        t -= quantum
    # TODO(synk): masked remainder tiles for dims with no 128-aligned divisor.
    return dim


# ----------------------------------------------------------------------------
# Shared BN epilogue: single-pass batch statistics + folded affine (+ReLU).
# h must hold the FULL batch along axis 0 (per-batch statistics).
# ----------------------------------------------------------------------------
def _bn_affine_relu(h, g, b, *, apply_affine, apply_relu, eps):
    m = h.shape[0]
    inv_m = 1.0 / m
    s = jnp.sum(h, axis=0, keepdims=True)
    s2 = jnp.sum(h * h, axis=0, keepdims=True)
    mean = s * inv_m
    var = jnp.maximum(s2 * inv_m - mean * mean, 0.0)     # biased var (PyTorch fwd)
    inv = lax.rsqrt(var + eps)                           # EUP slot
    if apply_affine:
        scale = g * inv
        shift = b - mean * scale
    else:
        scale = inv
        shift = -(mean * inv)
    y = h * scale + shift                                # one FMA pass
    if apply_relu:
        y = jnp.maximum(y, 0.0)
    return y


# ----------------------------------------------------------------------------
# Mode A: x fully resident in VMEM, grid over N only (no K reduction axis).
# ----------------------------------------------------------------------------
def _linear_bn_resident_kernel(*refs, apply_relu, apply_affine, eps):
    idx = 0
    x_ref = refs[idx]; idx += 1
    w_ref = refs[idx]; idx += 1
    if apply_affine:
        g_ref = refs[idx]; idx += 1
        b_ref = refs[idx]; idx += 1
    else:
        g_ref = b_ref = None
    o_ref = refs[idx]

    h = jnp.dot(x_ref[...], w_ref[...], preferred_element_type=jnp.float32)
    g = g_ref[...] if apply_affine else None
    b = b_ref[...] if apply_affine else None
    y = _bn_affine_relu(h, g, b, apply_affine=apply_affine,
                        apply_relu=apply_relu, eps=eps)
    o_ref[...] = y.astype(o_ref.dtype)


# ----------------------------------------------------------------------------
# Mode B: stream x over a K grid axis, accumulate (in scratch, or in-place in
# o_ref when the output is f32), BN epilogue at the last k step.
# ----------------------------------------------------------------------------
def _linear_bn_streamed_kernel(*refs, apply_relu, apply_affine, eps, inplace_acc):
    idx = 0
    x_ref = refs[idx]; idx += 1
    w_ref = refs[idx]; idx += 1
    if apply_affine:
        g_ref = refs[idx]; idx += 1
        b_ref = refs[idx]; idx += 1
    else:
        g_ref = b_ref = None
    o_ref = refs[idx]; idx += 1
    acc_ref = o_ref if inplace_acc else refs[idx]

    k = pl.program_id(1)
    contrib = jnp.dot(x_ref[...], w_ref[...], preferred_element_type=jnp.float32)

    @pl.when(k == 0)
    def _():
        acc_ref[...] = contrib

    @pl.when(k > 0)
    def _():
        acc_ref[...] += contrib

    @pl.when(k == pl.num_programs(1) - 1)
    def _():
        g = g_ref[...] if apply_affine else None
        b = b_ref[...] if apply_affine else None
        y = _bn_affine_relu(acc_ref[...], g, b, apply_affine=apply_affine,
                            apply_relu=apply_relu, eps=eps)
        o_ref[...] = y.astype(o_ref.dtype)


def linear_bn(x, w, gamma=None, beta=None, *, apply_relu, apply_affine,
              out_dtype=None, eps=_BN_EPS, force_streamed=False,
              tn_target=512, tk_target=512):
    """Fused Linear (NO bias) + BatchNorm1d (batch statistics) [+ ReLU].

    x: (B, K) activations, w: (K, N) weight pre-cast to the compute dtype,
    gamma/beta: (1, N) f32 (or None when apply_affine=False).

    NOTE: the BN fusion is only valid with the FULL batch in one output tile
    (tm == B); the M axis must never be tiled here.  The Linear bias is
    dropped: the mean-centering BN that follows cancels it exactly.
    """
    M, K = x.shape
    K2, N = w.shape
    assert K == K2, (K, K2)
    assert apply_affine == (gamma is not None)
    if out_dtype is None:
        out_dtype = x.dtype
    out_dtype = jnp.dtype(out_dtype)
    if gamma is not None and gamma.ndim == 1:
        gamma = gamma.reshape(1, N)
    if beta is not None and beta.ndim == 1:
        beta = beta.reshape(1, N)

    in_b = x.dtype.itemsize
    w_b = w.dtype.itemsize
    out_b = out_dtype.itemsize
    target = int(_vmem_budget_bytes() * 0.85)   # headroom for Mosaic scratch

    tn = _pick_tile(N, tn_target)
    # v7x has 2 TensorCores: keep >= 2 blocks on the "parallel" N axis when
    # a 128-aligned split exists, so both cores get work.
    if N // tn < 2 and tn % 256 == 0:
        tn //= 2

    # ---- Mode A: x resident (no K grid axis) --------------------------------
    def est_resident(tn_):
        return (2 * M * K * in_b            # x (conservatively counted 2x)
                + 2 * K * tn_ * w_b         # W N-slab, double buffered
                + 2 * M * tn_ * out_b       # out tile, double buffered
                + 3 * M * tn_ * 4           # f32 dot result + epilogue temps
                + 8 * tn_ * 4)              # gamma/beta tiles

    tn_res = tn
    while est_resident(tn_res) > target and tn_res % 256 == 0:
        tn_res //= 2

    if not force_streamed and est_resident(tn_res) <= target:
        tn = tn_res
        kernel = functools.partial(_linear_bn_resident_kernel,
                                   apply_relu=apply_relu,
                                   apply_affine=apply_affine, eps=eps)
        in_specs = [
            pl.BlockSpec((M, K), lambda j: (0, 0)),     # x pinned in VMEM
            pl.BlockSpec((K, tn), lambda j: (0, j)),    # W streamed N-slabs
        ]
        args = [x, w]
        if apply_affine:
            in_specs += [pl.BlockSpec((1, tn), lambda j: (0, j)),
                         pl.BlockSpec((1, tn), lambda j: (0, j))]
            args += [gamma, beta]
        return pl.pallas_call(
            kernel,
            out_shape=jax.ShapeDtypeStruct((M, N), out_dtype),
            grid_spec=pltpu.PrefetchScalarGridSpec(
                num_scalar_prefetch=0,
                grid=(N // tn,),
                in_specs=in_specs,
                out_specs=pl.BlockSpec((M, tn), lambda j: (0, j)),
            ),
            compiler_params=_compiler_params(("parallel",)),
        )(*args)

    # ---- Mode B: K-reduction grid, accumulate -------------------------------
    tk = _pick_tile(K, tk_target)
    inplace_acc = (out_dtype == jnp.float32)   # accumulate directly into o_ref

    def est_streamed(tn_, tk_):
        acc = 0 if inplace_acc else M * tn_ * 4
        return (acc
                + 2 * M * tk_ * in_b
                + 2 * tk_ * tn_ * w_b
                + 2 * M * tn_ * out_b
                + 3 * M * tn_ * 4            # f32 epilogue temps
                + 8 * tn_ * 4)

    while est_streamed(tn, tk) > target:
        if tk >= tn and tk % 256 == 0:
            tk //= 2
        elif tn % 256 == 0:
            tn //= 2
        elif tk % 256 == 0:
            tk //= 2
        else:
            break   # TODO(synk): masked remainder tiles for awkward dims

    kernel = functools.partial(_linear_bn_streamed_kernel,
                               apply_relu=apply_relu, apply_affine=apply_affine,
                               eps=eps, inplace_acc=inplace_acc)
    in_specs = [
        pl.BlockSpec((M, tk), lambda j, k: (0, k)),
        # TODO(synk): sweep pipeline_mode=pl.Buffered(3) on W for short K loops.
        pl.BlockSpec((tk, tn), lambda j, k: (k, j)),
    ]
    args = [x, w]
    if apply_affine:
        in_specs += [pl.BlockSpec((1, tn), lambda j, k: (0, j)),
                     pl.BlockSpec((1, tn), lambda j, k: (0, j))]
        args += [gamma, beta]
    scratch = [] if inplace_acc else [pltpu.VMEM((M, tn), jnp.float32)]
    return pl.pallas_call(
        kernel,
        out_shape=jax.ShapeDtypeStruct((M, N), out_dtype),
        grid_spec=pltpu.PrefetchScalarGridSpec(
            num_scalar_prefetch=0,
            grid=(N // tn, K // tk),       # reduction axis innermost
            in_specs=in_specs,
            out_specs=pl.BlockSpec((M, tn), lambda j, k: (0, j)),
            scratch_shapes=scratch,
        ),
        compiler_params=_compiler_params(("parallel", "arbitrary")),
    )(*args)


# ----------------------------------------------------------------------------
# Fully fused small-shape path: the whole projector in one pallas_call.
# ----------------------------------------------------------------------------
def _fused_projection_kernel(x_ref, w1_ref, g1_ref, b1_ref,
                             w2_ref, g2_ref, b2_ref, w3_ref, o_ref, *, eps):
    cd = w1_ref.dtype
    h = jnp.dot(x_ref[...], w1_ref[...], preferred_element_type=jnp.float32)
    h = _bn_affine_relu(h, g1_ref[...], b1_ref[...],
                        apply_affine=True, apply_relu=True, eps=eps)
    h = jnp.dot(h.astype(cd), w2_ref[...], preferred_element_type=jnp.float32)
    h = _bn_affine_relu(h, g2_ref[...], b2_ref[...],
                        apply_affine=True, apply_relu=True, eps=eps)
    h = jnp.dot(h.astype(cd), w3_ref[...], preferred_element_type=jnp.float32)
    h = _bn_affine_relu(h, None, None, apply_affine=False, apply_relu=False, eps=eps)
    o_ref[...] = h.astype(o_ref.dtype)


def _fused_vmem_estimate(M, K, H1, H2, N, in_b, w_b):
    weights = (K * H1 + H1 * H2 + H2 * N) * w_b
    act = 4 * M * max(H1, H2, N) * 4             # live f32 intermediates
    fixed = M * K * in_b + M * N * 4 + 8 * max(H1, H2, N) * 4
    return int(1.5 * (weights + act + fixed))    # safety factor


def _fused_projection(x, pp, eps=_BN_EPS):
    M = x.shape[0]
    N = pp["w3"].shape[1]
    kernel = functools.partial(_fused_projection_kernel, eps=eps)
    return pl.pallas_call(
        kernel,
        out_shape=jax.ShapeDtypeStruct((M, N), jnp.float32),
        compiler_params=_compiler_params(),
    )(x, pp["w1"], pp["g1"], pp["be1"], pp["w2"], pp["g2"], pp["be2"], pp["w3"])


# ----------------------------------------------------------------------------
# ProjectionHead forward
# ----------------------------------------------------------------------------
def init_params(key, input_dim, hidden_dim, output_dim):
    ks = jax.random.split(key, 6)

    def lin(kw, kb, fan_in, fan_out):
        bound = 1.0 / jnp.sqrt(fan_in)
        w = jax.random.uniform(kw, (fan_in, fan_out), jnp.float32, -bound, bound)
        b = jax.random.uniform(kb, (fan_out,), jnp.float32, -bound, bound)
        return w, b

    w1, b1 = lin(ks[0], ks[1], input_dim, hidden_dim)
    w2, b2 = lin(ks[2], ks[3], hidden_dim, hidden_dim)
    w3, b3 = lin(ks[4], ks[5], hidden_dim, output_dim)
    g1 = jnp.ones((hidden_dim,), jnp.float32)
    be1 = jnp.zeros((hidden_dim,), jnp.float32)
    g2 = jnp.ones((hidden_dim,), jnp.float32)
    be2 = jnp.zeros((hidden_dim,), jnp.float32)
    # Biases are kept for parity with the PyTorch module; the kernels drop them
    # (mean-centering BN cancels a per-feature bias exactly).
    return dict(w1=w1, b1=b1, w2=w2, b2=b2, w3=w3, b3=b3,
                g1=g1, be1=be1, g2=g2, be2=be2)


def prepare_params(params, compute_dtype=jnp.bfloat16):
    """ONE-TIME pre-cast of weights to the compute dtype and gamma/beta to
    (1, N) f32 -- avoids re-converting weights on every forward."""
    def row(v):
        return jnp.asarray(v, jnp.float32).reshape(1, -1)
    return dict(
        w1=params["w1"].astype(compute_dtype),
        w2=params["w2"].astype(compute_dtype),
        w3=params["w3"].astype(compute_dtype),
        g1=row(params["g1"]), be1=row(params["be1"]),
        g2=row(params["g2"]), be2=row(params["be2"]),
    )


def projection_head_forward(x, pp, *, force_layered=False, force_streamed=False,
                            eps=_BN_EPS, tn_target=512, tk_target=512):
    """Fused Linear+BN(+ReLU) x3.  `pp` = prepare_params(...).  Output is f32."""
    cd = pp["w1"].dtype
    x = x.astype(cd)
    M, K = x.shape
    H1 = pp["w1"].shape[1]
    H2 = pp["w2"].shape[1]
    N = pp["w3"].shape[1]

    if (not force_layered and not force_streamed
            and _fused_vmem_estimate(M, K, H1, H2, N, x.dtype.itemsize,
                                     pp["w1"].dtype.itemsize)
                <= _vmem_budget_bytes()):
        return _fused_projection(x, pp, eps=eps)

    h = linear_bn(x, pp["w1"], pp["g1"], pp["be1"],
                  apply_relu=True, apply_affine=True, out_dtype=cd,
                  force_streamed=force_streamed, eps=eps,
                  tn_target=tn_target, tk_target=tk_target)
    h = linear_bn(h, pp["w2"], pp["g2"], pp["be2"],
                  apply_relu=True, apply_affine=True, out_dtype=cd,
                  force_streamed=force_streamed, eps=eps,
                  tn_target=tn_target, tk_target=tk_target)
    h = linear_bn(h, pp["w3"], None, None,
                  apply_relu=False, apply_affine=False, out_dtype=jnp.float32,
                  force_streamed=force_streamed, eps=eps,
                  tn_target=tn_target, tk_target=tk_target)
    return h


def projection_head_reference(x, params):
    """Pure-JAX f32 reference faithful to the PyTorch module (incl. biases)."""
    p = params

    def bn(h, g, b, relu):
        mean = jnp.mean(h, axis=0, keepdims=True)
        var = jnp.mean((h - mean) ** 2, axis=0, keepdims=True)
        y = (h - mean) * lax.rsqrt(var + _BN_EPS)
        if g is not None:
            y = y * g + b
        return jnp.maximum(y, 0.0) if relu else y

    h = bn(x @ p["w1"] + p["b1"], p["g1"], p["be1"], True)
    h = bn(h @ p["w2"] + p["b2"], p["g2"], p["be2"], True)
    h = bn(h @ p["w3"] + p["b3"], None, None, False)
    return h


if __name__ == "__main__":
    # Small shapes consistent with the module (scaled-down 2048/8192/8192).
    batch, input_dim, hidden_dim, output_dim = 16, 128, 256, 256

    key = jax.random.PRNGKey(0)
    kx, kp = jax.random.split(key)
    x = jax.random.normal(kx, (batch, input_dim), jnp.float32)
    params = init_params(kp, input_dim, hidden_dim, output_dim)
    ref = projection_head_reference(x, params)

    # (1) f32, fused single-kernel path (tight check; validates bias drop too).
    pp32 = prepare_params(params, jnp.float32)
    out = jax.block_until_ready(jax.jit(projection_head_forward)(x, pp32))
    assert out.shape == (batch, output_dim)
    assert jnp.allclose(out, ref, rtol=2e-3, atol=2e-3), "fused f32 mismatch"

    # (2) f32, per-layer path (x-resident Mode A kernels).
    fwd_layered = jax.jit(functools.partial(projection_head_forward,
                                            force_layered=True))
    out = jax.block_until_ready(fwd_layered(x, pp32))
    assert jnp.allclose(out, ref, rtol=2e-3, atol=2e-3), "layered f32 mismatch"

    # (3) f32, per-layer streamed path (Mode B, multi-step K accumulation,
    #     in-place f32 accumulation on layers with f32 output).
    fwd_streamed = jax.jit(functools.partial(projection_head_forward,
                                             force_streamed=True,
                                             tn_target=128, tk_target=128))
    out = jax.block_until_ready(fwd_streamed(x, pp32))
    assert jnp.allclose(out, ref, rtol=2e-3, atol=2e-3), "streamed f32 mismatch"

    # (4) bf16 fast path (default compute dtype): loose sanity check.
    pp16 = prepare_params(params, jnp.bfloat16)
    out = jax.block_until_ready(jax.jit(projection_head_forward)(x, pp16))
    assert out.shape == (batch, output_dim)
    assert jnp.allclose(out, ref, rtol=1.5e-1, atol=1.5e-1), "bf16 mismatch"

    print("KERNEL_OK")
</pallas_src>

<mosaic_0001>
module attributes {stable_mosaic.version = 11 : i64} {
  func.func @_fused_projection_kernel(%arg0: memref<16x128xf32, #tpu.memory_space<vmem>>, %arg1: memref<128x256xf32, #tpu.memory_space<vmem>>, %arg2: memref<1x256xf32, #tpu.memory_space<vmem>>, %arg3: memref<1x256xf32, #tpu.memory_space<vmem>>, %arg4: memref<256x256xf32, #tpu.memory_space<vmem>>, %arg5: memref<1x256xf32, #tpu.memory_space<vmem>>, %arg6: memref<1x256xf32, #tpu.memory_space<vmem>>, %arg7: memref<256x256xf32, #tpu.memory_space<vmem>>, %arg8: memref<16x256xf32, #tpu.memory_space<vmem>>) attributes {dimension_semantics = [], scalar_prefetch = 0 : i64, scratch_operands = 0 : i64, tpu.core_type = #tpu.core_type<tc>} {
    %c0 = arith.constant 0 : index
    %c0_0 = arith.constant 0 : index
    %0 = vector.load %arg0[%c0, %c0_0] : memref<16x128xf32, #tpu.memory_space<vmem>>, vector<16x128xf32>
    %c0_1 = arith.constant 0 : index
    %c0_2 = arith.constant 0 : index
    %1 = vector.load %arg1[%c0_1, %c0_2] : memref<128x256xf32, #tpu.memory_space<vmem>>, vector<128x256xf32>
    %cst = arith.constant dense<0.000000e+00> : vector<16x256xf32>
    %2 = tpu.matmul %0, %1, %cst {dimension_numbers = #tpu.dot_dimension_numbers<[1], [0], [0], [1], [0, 0, 1, 1], [], []>} : vector<16x128xf32>, vector<128x256xf32>, vector<16x256xf32> -> vector<16x256xf32>
    %c0_3 = arith.constant 0 : index
    %c0_4 = arith.constant 0 : index
    %3 = vector.load %arg2[%c0_3, %c0_4] : memref<1x256xf32, #tpu.memory_space<vmem>>, vector<1x256xf32>
    %c0_5 = arith.constant 0 : index
    %c0_6 = arith.constant 0 : index
    %4 = vector.load %arg3[%c0_5, %c0_6] : memref<1x256xf32, #tpu.memory_space<vmem>>, vector<1x256xf32>
    %cst_7 = arith.constant dense<0.000000e+00> : vector<256xf32>
    %5 = vector.multi_reduction <add>, %2, %cst_7 [0] : vector<16x256xf32> to vector<256xf32>
    %6 = vector.shape_cast %5 : vector<256xf32> to vector<1x256xf32>
    %7 = arith.mulf %2, %2 : vector<16x256xf32>
    %cst_8 = arith.constant dense<0.000000e+00> : vector<256xf32>
    %8 = vector.multi_reduction <add>, %7, %cst_8 [0] : vector<16x256xf32> to vector<256xf32>
    %9 = vector.shape_cast %8 : vector<256xf32> to vector<1x256xf32>
    %cst_9 = arith.constant 6.250000e-02 : f32
    %10 = vector.broadcast %cst_9 : f32 to vector<1x256xf32>
    %11 = arith.mulf %6, %10 : vector<1x256xf32>
    %cst_10 = arith.constant 6.250000e-02 : f32
    %12 = vector.broadcast %cst_10 : f32 to vector<1x256xf32>
    %13 = arith.mulf %9, %12 : vector<1x256xf32>
    %14 = arith.mulf %11, %11 : vector<1x256xf32>
    %15 = arith.subf %13, %14 : vector<1x256xf32>
    %cst_11 = arith.constant 0.000000e+00 : f32
    %16 = vector.broadcast %cst_11 : f32 to vector<1x256xf32>
    %17 = arith.maximumf %15, %16 : vector<1x256xf32>
    %cst_12 = arith.constant 9.99999974E-6 : f32
    %18 = vector.broadcast %cst_12 : f32 to vector<1x256xf32>
    %19 = arith.addf %17, %18 : vector<1x256xf32>
    %20 = math.rsqrt %19 : vector<1x256xf32>
    %21 = arith.mulf %3, %20 : vector<1x256xf32>
    %22 = arith.mulf %11, %21 : vector<1x256xf32>
    %23 = arith.subf %4, %22 : vector<1x256xf32>
    %24 = vector.broadcast %21 : vector<1x256xf32> to vector<16x256xf32>
    %25 = arith.mulf %2, %24 : vector<16x256xf32>
    %26 = vector.broadcast %23 : vector<1x256xf32> to vector<16x256xf32>
    %27 = arith.addf %25, %26 : vector<16x256xf32>
    %cst_13 = arith.constant 0.000000e+00 : f32
    %28 = vector.broadcast %cst_13 : f32 to vector<16x256xf32>
    %29 = arith.maximumf %27, %28 : vector<16x256xf32>
    %c0_14 = arith.constant 0 : index
    %c0_15 = arith.constant 0 : index
    %30 = vector.load %arg4[%c0_14, %c0_15] : memref<256x256xf32, #tpu.memory_space<vmem>>, vector<256x256xf32>
    %cst_16 = arith.constant dense<0.000000e+00> : vector<16x256xf32>
    %31 = tpu.matmul %29, %30, %cst_16 {dimension_numbers = #tpu.dot_dimension_numbers<[1], [0], [0], [1], [0, 0, 1, 1], [], []>} : vector<16x256xf32>, vector<256x256xf32>, vector<16x256xf32> -> vector<16x256xf32>
    %c0_17 = arith.constant 0 : index
    %c0_18 = arith.constant 0 : index
    %32 = vector.load %arg5[%c0_17, %c0_18] : memref<1x256xf32, #tpu.memory_space<vmem>>, vector<1x256xf32>
    %c0_19 = arith.constant 0 : index
    %c0_20 = arith.constant 0 : index
    %33 = vector.load %arg6[%c0_19, %c0_20] : memref<1x256xf32, #tpu.memory_space<vmem>>, vector<1x256xf32>
    %cst_21 = arith.constant dense<0.000000e+00> : vector<256xf32>
    %34 = vector.multi_reduction <add>, %31, %cst_21 [0] : vector<16x256xf32> to vector<256xf32>
    %35 = vector.shape_cast %34 : vector<256xf32> to vector<1x256xf32>
    %36 = arith.mulf %31, %31 : vector<16x256xf32>
    %cst_22 = arith.constant dense<0.000000e+00> : vector<256xf32>
    %37 = vector.multi_reduction <add>, %36, %cst_22 [0] : vector<16x256xf32> to vector<256xf32>
    %38 = vector.shape_cast %37 : vector<256xf32> to vector<1x256xf32>
    %cst_23 = arith.constant 6.250000e-02 : f32
    %39 = vector.broadcast %cst_23 : f32 to vector<1x256xf32>
    %40 = arith.mulf %35, %39 : vector<1x256xf32>
    %cst_24 = arith.constant 6.250000e-02 : f32
    %41 = vector.broadcast %cst_24 : f32 to vector<1x256xf32>
    %42 = arith.mulf %38, %41 : vector<1x256xf32>
    %43 = arith.mulf %40, %40 : vector<1x256xf32>
    %44 = arith.subf %42, %43 : vector<1x256xf32>
    %cst_25 = arith.constant 0.000000e+00 : f32
    %45 = vector.broadcast %cst_25 : f32 to vector<1x256xf32>
    %46 = arith.maximumf %44, %45 : vector<1x256xf32>
    %cst_26 = arith.constant 9.99999974E-6 : f32
    %47 = vector.broadcast %cst_26 : f32 to vector<1x256xf32>
    %48 = arith.addf %46, %47 : vector<1x256xf32>
    %49 = math.rsqrt %48 : vector<1x256xf32>
    %50 = arith.mulf %32, %49 : vector<1x256xf32>
    %51 = arith.mulf %40, %50 : vector<1x256xf32>
    %52 = arith.subf %33, %51 : vector<1x256xf32>
    %53 = vector.broadcast %50 : vector<1x256xf32> to vector<16x256xf32>
    %54 = arith.mulf %31, %53 : vector<16x256xf32>
    %55 = vector.broadcast %52 : vector<1x256xf32> to vector<16x256xf32>
    %56 = arith.addf %54, %55 : vector<16x256xf32>
    %cst_27 = arith.constant 0.000000e+00 : f32
    %57 = vector.broadcast %cst_27 : f32 to vector<16x256xf32>
    %58 = arith.maximumf %56, %57 : vector<16x256xf32>
    %c0_28 = arith.constant 0 : index
    %c0_29 = arith.constant 0 : index
    %59 = vector.load %arg7[%c0_28, %c0_29] : memref<256x256xf32, #tpu.memory_space<vmem>>, vector<256x256xf32>
    %cst_30 = arith.constant dense<0.000000e+00> : vector<16x256xf32>
    %60 = tpu.matmul %58, %59, %cst_30 {dimension_numbers = #tpu.dot_dimension_numbers<[1], [0], [0], [1], [0, 0, 1, 1], [], []>} : vector<16x256xf32>, vector<256x256xf32>, vector<16x256xf32> -> vector<16x256xf32>
    %cst_31 = arith.constant dense<0.000000e+00> : vector<256xf32>
    %61 = vector.multi_reduction <add>, %60, %cst_31 [0] : vector<16x256xf32> to vector<256xf32>
    %62 = vector.shape_cast %61 : vector<256xf32> to vector<1x256xf32>
    %63 = arith.mulf %60, %60 : vector<16x256xf32>
    %cst_32 = arith.constant dense<0.000000e+00> : vector<256xf32>
    %64 = vector.multi_reduction <add>, %63, %cst_32 [0] : vector<16x256xf32> to vector<256xf32>
    %65 = vector.shape_cast %64 : vector<256xf32> to vector<1x256xf32>
    %cst_33 = arith.constant 6.250000e-02 : f32
    %66 = vector.broadcast %cst_33 : f32 to vector<1x256xf32>
    %67 = arith.mulf %62, %66 : vector<1x256xf32>
    %cst_34 = arith.constant 6.250000e-02 : f32
    %68 = vector.broadcast %cst_34 : f32 to vector<1x256xf32>
    %69 = arith.mulf %65, %68 : vector<1x256xf32>
    %70 = arith.mulf %67, %67 : vector<1x256xf32>
    %71 = arith.subf %69, %70 : vector<1x256xf32>
    %cst_35 = arith.constant 0.000000e+00 : f32
    %72 = vector.broadcast %cst_35 : f32 to vector<1x256xf32>
    %73 = arith.maximumf %71, %72 : vector<1x256xf32>
    %cst_36 = arith.constant 9.99999974E-6 : f32
    %74 = vector.broadcast %cst_36 : f32 to vector<1x256xf32>
    %75 = arith.addf %73, %74 : vector<1x256xf32>
    %76 = math.rsqrt %75 : vector<1x256xf32>
    %77 = arith.mulf %67, %76 : vector<1x256xf32>
    %cst_37 = arith.constant 0.000000e+00 : f32
    %78 = vector.broadcast %cst_37 : f32 to vector<1x256xf32>
    %79 = arith.subf %78, %77 : vector<1x256xf32>
    %80 = vector.broadcast %76 : vector<1x256xf32> to vector<16x256xf32>
    %81 = arith.mulf %60, %80 : vector<16x256xf32>
    %82 = vector.broadcast %79 : vector<1x256xf32> to vector<16x256xf32>
    %83 = arith.addf %81, %82 : vector<16x256xf32>
    %c0_38 = arith.constant 0 : index
    %c0_39 = arith.constant 0 : index
    %84 = vector.load %arg8[%c0_38, %c0_39] : memref<16x256xf32, #tpu.memory_space<vmem>>, vector<16x256xf32>
    tpu.vector_store %arg8[%c0_38, %c0_39], %83 {strides = array<i32>} : memref<16x256xf32, #tpu.memory_space<vmem>>, vector<16x256xf32>,
    return
  }
}

</mosaic_0001>

<bundles_post_ra>
// kernel: projection_head_forward.1
= control target key start
LH: loop header
LB: loop body
LE: loop exit
PB: predicated region body
PF: predicated region fallthrough
CT: control target
= control target key end

     0   :  { %13 = vsyncpa [#allocation3], 0  ;;  %s1330_s0 = inlined_call_operand.hbm [shape: f32[16,128], index: 0, kind: input, shape index: {}]   ;;  %s1331_s1 = inlined_call_operand.hbm [shape: f32[128,256], index: 1, kind: input, shape index: {}]   ;;  %s1332_s2 = inlined_call_operand.vmem [shape: f32[1,256], index: 2, kind: input, shape index: {}]   ;;  %s1333_s3 = inlined_call_operand.hbm [shape: f32[1,256], index: 3, kind: input, shape index: {}]   ;;  %s1334_s4 = inlined_call_operand.hbm [shape: f32[256,256], index: 4, kind: input, shape index: {}]   ;;  %s1335_s5 = inlined_call_operand.vmem [shape: f32[1,256], index: 5, kind: input, shape index: {}]   ;;  %s1336_s6 = inlined_call_operand.vmem [shape: f32[1,256], index: 6, kind: input, shape index: {}]   ;;  %s1337_s7 = inlined_call_operand.hbm [shape: f32[256,256], index: 7, kind: input, shape index: {}]   ;;  %s1338_s8 = inlined_call_operand.hbm [shape: f32[16,256], index: 8, kind: output, shape index: {}]  }
   0x1   :  { %14 = vsyncpa [#allocation6], 0 }
   0x2   :  { %15 = vsyncpa [#allocation9], 0 }
   0x3   :  { %16 = vsyncpa [#allocation4], 0  ;;  %s1138_s27 = smov [#allocation5]   ;;  %s998_s9 = scalar_lea.hbm %s1331_s1, 4096 }
   0x4   :  { %s34_s28 = sshll.u32 %s1138_s27, 4  ;;  %p999_p0 = scmp.ne.s32.totalorder %s1331_s1, %s998_s9  ;;  %s35_s28 = int_to_ptr.vmem [resolvable:$true] %s34_s28 }
   0x5   :  { %p1002_p1 = scmp.lt.u32.totalorder %s998_s9, %s1331_s1 }
   0x7   :  { %p1004_p2 = pnand %p1002_p1, %p999_p0 }
   0x9   :  { %1007 = shalt.err (!%p1004_p2)
}
   0xa   :  { %s1008_s14 = scalar_lea.vmem %s35_s28, 4096  ;;  %p1013_p4 = scmp.lt.s32.totalorder %s35_s28, %s35_s28 }
   0xb   :  { %p1009_p3 = scmp.ne.s32.totalorder %s35_s28, %s1008_s14  ;;  %p1014_p5 = scmp.lt.s32.totalorder %s1008_s14, %s1008_s14 }
   0xd   :  { %p1015_p6 = por %p1014_p5, %p1013_p4 }
   0xf   :  { %p1016_p7 = pnand %p1015_p6, %p1009_p3 }
  0x11   :  { %1019 = shalt.err (!%p1016_p7)
}
  0x12   :  { %s1139_s15 = smov 256   ;;  %s1140_s16 = smov 16  }
  0x13   :  { %40 = dma.hbm_to_vmem [thread:$0]  %s1331_s1, 4096, %s35_s28, [#allocation6], %s1139_s15, %s1139_s15, %s1140_s16  }
  0x14   :  { %s1141_s19 = smov [#allocation8]   ;;  %s1142_s21 = smov [#allocation2]  }
  0x15   :  { %s58_s20 = sshll.u32 %s1141_s19, 4  ;;  %s22_s22 = sshll.u32 %s1142_s21, 4  ;;  %s59_s20 = int_to_ptr.vmem [resolvable:$true] %s58_s20  ;;  %s23_s22 = int_to_ptr.vmem [resolvable:$true] %s22_s22 }
  0x16   :  { %s1020_s25 = scalar_lea.hbm %s1334_s4, 8192 }
  0x17   :  { %p1021_p8 = scmp.ne.s32.totalorder %s1334_s4, %s1020_s25  ;;  %p1024_p9 = scmp.lt.u32.totalorder %s1020_s25, %s1334_s4 }
  0x19   :  { %p1026_p10 = pnand %p1024_p9, %p1021_p8 }
  0x1b   :  { %1029 = shalt.err (!%p1026_p10)
}
  0x1c   :  { %s1030_s1 = scalar_lea.vmem %s59_s20, 8192  ;;  %p1035_p12 = scmp.lt.s32.totalorder %s59_s20, %s59_s20 }
  0x1d   :  { %p1031_p11 = scmp.ne.s32.totalorder %s59_s20, %s1030_s1  ;;  %p1036_p13 = scmp.lt.s32.totalorder %s1030_s1, %s1030_s1 }
  0x1f   :  { %p1037_p0 = por %p1036_p13, %p1035_p12 }
  0x21   :  { %p1038_p1 = pnand %p1037_p0, %p1031_p11 }
  0x23   :  { %1041 = shalt.err (!%p1038_p1)
}
  0x24   :  { %64 = dma.hbm_to_vmem [thread:$0]  %s1334_s4, 8192, %s59_s20, [#allocation9], %s1139_s15, %s1139_s15, %s1140_s16  }
  0x25   :  { %s1042_s12 = scalar_lea.hbm %s1330_s0, 256 }
  0x26   :  { %p1043_p2 = scmp.ne.s32.totalorder %s1330_s0, %s1042_s12  ;;  %p1046_p3 = scmp.lt.u32.totalorder %s1042_s12, %s1330_s0 }
  0x28   :  { %p1048_p4 = pnand %p1046_p3, %p1043_p2 }
  0x2a   :  { %1051 = shalt.err (!%p1048_p4)
}
  0x2b   :  { %s1052_s19 = scalar_lea.vmem %s23_s22, 256  ;;  %p1057_p6 = scmp.lt.s32.totalorder %s23_s22, %s23_s22 }
  0x2c   :  { %p1053_p5 = scmp.ne.s32.totalorder %s23_s22, %s1052_s19  ;;  %p1058_p7 = scmp.lt.s32.totalorder %s1052_s19, %s1052_s19 }
  0x2e   :  { %p1059_p8 = por %p1058_p7, %p1057_p6 }
  0x30   :  { %p1060_p9 = pnand %p1059_p8, %p1053_p5 }
  0x32   :  { %1063 = shalt.err (!%p1060_p9)
}
  0x33   :  { %s1143_s4 = smov 128   ;;  %s1144_s20 = smov 8  }
  0x34   :  { %28 = dma.hbm_to_vmem [thread:$0]  %s1330_s0, 256, %s23_s22, [#allocation3], %s1143_s4, %s1143_s4, %s1144_s20  }
  0x35   :  { %s1145_s24 = smov [#allocation7]   ;;  %s1146_s26 = smov [#allocation10]  }
  0x36   :  { %s49_s25 = sshll.u32 %s1145_s24, 4  ;;  %s74_s27 = sshll.u32 %s1146_s26, 4  ;;  %s50_s25 = int_to_ptr.vmem [resolvable:$true] %s49_s25  ;;  %s75_s27 = int_to_ptr.vmem [resolvable:$true] %s74_s27 }
  0x37   :  { %s1064_s1 = scalar_lea.hbm %s1333_s3, 32 }
  0x38   :  { %p1065_p10 = scmp.ne.s32.totalorder %s1333_s3, %s1064_s1  ;;  %p1068_p11 = scmp.lt.u32.totalorder %s1064_s1, %s1333_s3 }
  0x3a   :  { %p1070_p12 = pnand %p1068_p11, %p1065_p10 }
  0x3c   :  { %1073 = shalt.err (!%p1070_p12)
}
  0x3d   :  { %s1074_s0 = scalar_lea.vmem %s50_s25, 32  ;;  %p1079_p0 = scmp.lt.s32.totalorder %s50_s25, %s50_s25 }
  0x3e   :  { %p1075_p13 = scmp.ne.s32.totalorder %s50_s25, %s1074_s0  ;;  %p1080_p1 = scmp.lt.s32.totalorder %s1074_s0, %s1074_s0 }
  0x40   :  { %p1081_p2 = por %p1080_p1, %p1079_p0 }
  0x42   :  { %p1082_p3 = pnand %p1081_p2, %p1075_p13 }
  0x44   :  { %1085 = shalt.err (!%p1082_p3)
}
  0x45   :  { %52 = dma.hbm_to_vmem [thread:$0]  %s1333_s3, 32, %s50_s25, [#allocation6]  }
  0x46   :  { %s1086_s17 = scalar_lea.hbm %s1337_s7, 8192 }
  0x47   :  { %p1087_p4 = scmp.ne.s32.totalorder %s1337_s7, %s1086_s17  ;;  %p1090_p5 = scmp.lt.u32.totalorder %s1086_s17, %s1337_s7 }
  0x49   :  { %p1092_p6 = pnand %p1090_p5, %p1087_p4 }
  0x4b   :  { %1095 = shalt.err (!%p1092_p6)
}
  0x4c   :  { %s1096_s21 = scalar_lea.vmem %s75_s27, 8192  ;;  %p1101_p8 = scmp.lt.s32.totalorder %s75_s27, %s75_s27 }
  0x4d   :  { %p1097_p7 = scmp.ne.s32.totalorder %s75_s27, %s1096_s21  ;;  %p1102_p9 = scmp.lt.s32.totalorder %s1096_s21, %s1096_s21 }
  0x4f   :  { %p1103_p10 = por %p1102_p9, %p1101_p8 }
  0x51   :  { %p1104_p11 = pnand %p1103_p10, %p1097_p7 }
  0x53   :  { %1107 = shalt.err (!%p1104_p11)
}
  0x54   :  { %80 = dma.hbm_to_vmem [thread:$0]  %s1337_s7, 8192, %s75_s27, [#allocation9], %s1139_s15, %s1139_s15, %s1140_s16  }
  0x55   :  { %1130 = dma.done.wait [#allocation3], 256  }
  0x56   :  { %1131 = vsyncadd [#allocation3], 4294967040 }
  0x57   :  { %1132 = dma.done.wait [#allocation6], 4128  }
  0x58   :  { %1133 = vsyncadd [#allocation6], 4294963168 }
  0x59   :  { %1134 = dma.done.wait [#allocation9], 16384  }
  0x5a   :  { %1135 = vsyncadd [#allocation9], 4294950912  ;;  %v1147_v0 = vmov 0.0   ;;  %v99_v1 = vld [vmem:[#allocation5 + $0x8] sm:$0xff]  ;;  %v101_v2 = vld [vmem:[#allocation5 + $0x18] sm:$0xff] }
  0x5b   :  { %194 = vmatprep.mubr.f32.mxu0 %v1147_v0  ;;  %v98_v3 = vld [vmem:[#allocation5] sm:$0xff]  ;;  %v814_v4 = vpack.c.bf16 %v101_v2, %v99_v1  ;;  %v100_v5 = vld [vmem:[#allocation5 + $0x10] sm:$0xff]  ;;  %v103_v6 = vld [vmem:[#allocation5 + $0x28] sm:$0xff] }
  0x5c   :  { %v105_v7 = vld [vmem:[#allocation5 + $0x38] sm:$0xff]  ;;  %v816_v8 = vpack.c.bf16 %v100_v5, %v98_v3  ;;  %v102_v10 = vld [vmem:[#allocation5 + $0x20] sm:$0xff]  ;;  %v104_v11 = vld [vmem:[#allocation5 + $0x30] sm:$0xff] }
  0x5d   :  { %v818_v9 = vpack.c.bf16 %v105_v7, %v103_v6  ;;  %v107_v12 = vld [vmem:[#allocation5 + $0x48] sm:$0xff]  ;;  %815 = vmatprep.subr.bf16.mxu0 %v814_v4  ;;  %v109_v13 = vld [vmem:[#allocation5 + $0x58] sm:$0xff]  ;;  %v820_v14 = vpack.c.bf16 %v104_v11, %v102_v10  ;;  %v106_v16 = vld [vmem:[#allocation5 + $0x40] sm:$0xff] }
  0x5e   :  { %817 = vmatpush1.bf16.msra.mxu0 %v816_v8  ;;  %v822_v15 = vpack.c.bf16 %v109_v13, %v107_v12  ;;  %v108_v17 = vld [vmem:[#allocation5 + $0x50] sm:$0xff]  ;;  %v111_v18 = vld [vmem:[#allocation5 + $0x68] sm:$0xff]  ;;  %v113_v19 = vld [vmem:[#allocation5 + $0x78] sm:$0xff] }
  0x5f   :  { %819 = vmatprep.subr.bf16.mxu0 %v818_v9  ;;  %v824_v20 = vpack.c.bf16 %v108_v17, %v106_v16  ;;  %v826_v21 = vpack.c.bf16 %v113_v19, %v111_v18  ;;  %v110_v22 = vld [vmem:[#allocation5 + $0x60] sm:$0xff]  ;;  %v112_v23 = vld [vmem:[#allocation5 + $0x70] sm:$0xff]  ;;  %v115_v24 = vld [vmem:[#allocation5 + $0x88] sm:$0xff] }
  0x60   :  { %v117_v25 = vld [vmem:[#allocation5 + $0x98] sm:$0xff]  ;;  %v828_v26 = vpack.c.bf16 %v112_v23, %v110_v22  ;;  %v114_v28 = vld [vmem:[#allocation5 + $0x80] sm:$0xff]  ;;  %v116_v29 = vld [vmem:[#allocation5 + $0x90] sm:$0xff] }
  0x61   :  { %v830_v27 = vpack.c.bf16 %v117_v25, %v115_v24  ;;  %v119_v30 = vld [vmem:[#allocation5 + $0xa8] sm:$0xff]  ;;  %v121_v31 = vld [vmem:[#allocation5 + $0xb8] sm:$0xff]  ;;  %v832_v32 = vpack.c.bf16 %v116_v29, %v114_v28  ;;  %v118_v34 = vld [vmem:[#allocation5 + $0xa0] sm:$0xff] }
  0x62   :  { %821 = vmatpush1.bf16.msra.mxu0 %v820_v14  ;;  %v834_v33 = vpack.c.bf16 %v121_v31, %v119_v30  ;;  %v120_v35 = vld [vmem:[#allocation5 + $0xb0] sm:$0xff]  ;;  %v123_v36 = vld [vmem:[#allocation5 + $0xc8] sm:$0xff]  ;;  %v125_v37 = vld [vmem:[#allocation5 + $0xd8] sm:$0xff] }
  0x63   :  { %823 = vmatprep.subr.bf16.mxu0 %v822_v15  ;;  %v836_v38 = vpack.c.bf16 %v120_v35, %v118_v34  ;;  %v838_v39 = vpack.c.bf16 %v125_v37, %v123_v36  ;;  %v122_v40 = vld [vmem:[#allocation5 + $0xc0] sm:$0xff]  ;;  %v124_v41 = vld [vmem:[#allocation5 + $0xd0] sm:$0xff]  ;;  %v127_v42 = vld [vmem:[#allocation5 + $0xe8] sm:$0xff] }
  0x64   :  { %v129_v43 = vld [vmem:[#allocation5 + $0xf8] sm:$0xff]  ;;  %v840_v44 = vpack.c.bf16 %v124_v41, %v122_v40  ;;  %v126_v46 = vld [vmem:[#allocation5 + $0xe0] sm:$0xff]  ;;  %v128_v47 = vld [vmem:[#allocation5 + $0xf0] sm:$0xff] }
  0x65   :  { %v842_v45 = vpack.c.bf16 %v129_v43, %v127_v42  ;;  %v844_v48 = vpack.c.bf16 %v128_v47, %v126_v46  ;;  %v96_v49 = vld [vmem:[#allocation2] sm:$0xff]  ;;  %v97_v50 = vld [vmem:[#allocation2 + $0x8] sm:$0xff]  ;;  %v329_v54 = vld [vmem:[#allocation8] sm:$0xff] }
  0x66   :  { %825 = vmatpush1.bf16.msra.mxu0 %v824_v20  ;;  %v330_v51 = vld [vmem:[#allocation8 + $0x8] sm:$0xff]  ;;  %v332_v52 = vld [vmem:[#allocation8 + $0x18] sm:$0xff]  ;;  %v331_v55 = vld [vmem:[#allocation8 + $0x10] sm:$0xff] }
  0x67   :  { %827 = vmatprep.subr.bf16.mxu0 %v826_v21  ;;  %v846_v53 = vpack.c.bf16 %v332_v52, %v330_v51  ;;  %v848_v56 = vpack.c.bf16 %v331_v55, %v329_v54  ;;  %v334_v57 = vld [vmem:[#allocation8 + $0x28] sm:$0xff]  ;;  %v336_v58 = vld [vmem:[#allocation8 + $0x38] sm:$0xff]  ;;  %v333_v60 = vld [vmem:[#allocation8 + $0x20] sm:$0xff] }
  0x68   :  { %v850_v59 = vpack.c.bf16 %v336_v58, %v334_v57  ;;  %v335_v61 = vld [vmem:[#allocation8 + $0x30] sm:$0xff]  ;;  %v338_v63 = vld [vmem:[#allocation8 + $0x48] sm:$0xff]  ;;  %v337_v2 = vld [vmem:[#allocation8 + $0x40] sm:$0xff] }
  0x69   :  { %847 = vmatprep.subr.bf16.mxu1 %v846_v53  ;;  %v852_v62 = vpack.c.bf16 %v335_v61, %v333_v60  ;;  %v339_v3 = vld [vmem:[#allocation8 + $0x50] sm:$0xff]  ;;  %v342_v5 = vld [vmem:[#allocation8 + $0x68] sm:$0xff]  ;;  %v344_v6 = vld [vmem:[#allocation8 + $0x78] sm:$0xff] }
  0x6a   :  { %829 = vmatpush1.bf16.msra.mxu0 %v828_v26  ;;  %849 = vmatpush1.bf16.msra.mxu1 %v848_v56  ;;  %v856_v4 = vpack.c.bf16 %v339_v3, %v337_v2  ;;  %v858_v7 = vpack.c.bf16 %v344_v6, %v342_v5  ;;  %v341_v8 = vld [vmem:[#allocation8 + $0x60] sm:$0xff]  ;;  %v343_v9 = vld [vmem:[#allocation8 + $0x70] sm:$0xff]  ;;  %v346_v11 = vld [vmem:[#allocation8 + $0x88] sm:$0xff] }
  0x6b   :  { %831 = vmatprep.subr.bf16.mxu0 %v830_v27  ;;  %851 = vmatprep.subr.bf16.mxu1 %v850_v59  ;;  %v860_v10 = vpack.c.bf16 %v343_v9, %v341_v8  ;;  %v348_v12 = vld [vmem:[#allocation8 + $0x98] sm:$0xff]  ;;  %v345_v14 = vld [vmem:[#allocation8 + $0x80] sm:$0xff]  ;;  %v347_v15 = vld [vmem:[#allocation8 + $0x90] sm:$0xff] }
  0x6c   :  { %v862_v13 = vpack.c.bf16 %v348_v12, %v346_v11  ;;  %v864_v16 = vpack.c.bf16 %v347_v15, %v345_v14  ;;  %v350_v17 = vld [vmem:[#allocation8 + $0xa8] sm:$0xff]  ;;  %v352_v18 = vld [vmem:[#allocation8 + $0xb8] sm:$0xff]  ;;  %v349_v20 = vld [vmem:[#allocation8 + $0xa0] sm:$0xff] }
  0x6d   :  { %v866_v19 = vpack.c.bf16 %v352_v18, %v350_v17  ;;  %v351_v21 = vld [vmem:[#allocation8 + $0xb0] sm:$0xff]  ;;  %v354_v23 = vld [vmem:[#allocation8 + $0xc8] sm:$0xff]  ;;  %v356_v24 = vld [vmem:[#allocation8 + $0xd8] sm:$0xff] }
  0x6e   :  { %833 = vmatpush1.bf16.msra.mxu0 %v832_v32  ;;  %853 = vmatpush1.bf16.msra.mxu1 %v852_v62  ;;  %v868_v22 = vpack.c.bf16 %v351_v21, %v349_v20  ;;  %v870_v25 = vpack.c.bf16 %v356_v24, %v354_v23  ;;  %v353_v26 = vld [vmem:[#allocation8 + $0xc0] sm:$0xff]  ;;  %v355_v27 = vld [vmem:[#allocation8 + $0xd0] sm:$0xff]  ;;  %v358_v29 = vld [vmem:[#allocation8 + $0xe8] sm:$0xff] }
  0x6f   :  { %835 = vmatprep.subr.bf16.mxu0 %v834_v33  ;;  %v872_v28 = vpack.c.bf16 %v355_v27, %v353_v26  ;;  %v360_v30 = vld [vmem:[#allocation8 + $0xf8] sm:$0xff]  ;;  %v357_v32 = vld [vmem:[#allocation8 + $0xe0] sm:$0xff]  ;;  %v359_v33 = vld [vmem:[#allocation8 + $0xf0] sm:$0xff] }
  0x70   :  { %v874_v31 = vpack.c.bf16 %v360_v30, %v358_v29  ;;  %v876_v34 = vpack.c.bf16 %v359_v33, %v357_v32  ;;  %v362_v35 = vld [vmem:[#allocation8 + $0x108] sm:$0xff]  ;;  %v364_v36 = vld [vmem:[#allocation8 + $0x118] sm:$0xff]  ;;  %v371_v51 = vld [vmem:[#allocation8 + $0x150] sm:$0xff] }
  0x71   :  { %v878_v37 = vpack.c.bf16 %v364_v36, %v362_v35  ;;  %v366_v41 = vld [vmem:[#allocation8 + $0x128] sm:$0xff]  ;;  %v368_v42 = vld [vmem:[#allocation8 + $0x138] sm:$0xff]  ;;  %v373_v56 = vld [vmem:[#allocation8 + $0x160] sm:$0xff] }
  0x72   :  { %837 = vmatpush1.bf16.msra.mxu0 %v836_v38  ;;  %v361_v38 = vld [vmem:[#allocation8 + $0x100] sm:$0xff]  ;;  %v882_v43 = vpack.c.bf16 %v368_v42, %v366_v41  ;;  %v370_v47 = vld [vmem:[#allocation8 + $0x148] sm:$0xff]  ;;  %v376_v54 = vld [vmem:[#allocation8 + $0x178] sm:$0xff] }
  0x73   :  { %839 = vmatprep.subr.bf16.mxu0 %v838_v39  ;;  %v363_v39 = vld [vmem:[#allocation8 + $0x110] sm:$0xff]  ;;  %v374_v53 = vld [vmem:[#allocation8 + $0x168] sm:$0xff]  ;;  %v380_v60 = vld [vmem:[#allocation8 + $0x198] sm:$0xff] }
  0x74   :  { %v880_v40 = vpack.c.bf16 %v363_v39, %v361_v38  ;;  %v890_v55 = vpack.c.bf16 %v376_v54, %v374_v53  ;;  %v375_v57 = vld [vmem:[#allocation8 + $0x170] sm:$0xff]  ;;  %v378_v59 = vld [vmem:[#allocation8 + $0x188] sm:$0xff]  ;;  %v377_v62 = vld [vmem:[#allocation8 + $0x180] sm:$0xff] }
  0x75   :  { %v892_v58 = vpack.c.bf16 %v375_v57, %v373_v56  ;;  %v894_v61 = vpack.c.bf16 %v380_v60, %v378_v59  ;;  %v384_v2 = vld [vmem:[#allocation8 + $0x1b8] sm:$0xff]  ;;  %v381_v3 = vld [vmem:[#allocation8 + $0x1a0] sm:$0xff]  ;;  %v383_v5 = vld [vmem:[#allocation8 + $0x1b0] sm:$0xff] }
  0x76   :  { %841 = vmatpush1.bf16.msra.mxu0 %v840_v44  ;;  %v365_v44 = vld [vmem:[#allocation8 + $0x120] sm:$0xff]  ;;  %v386_v6 = vld [vmem:[#allocation8 + $0x1c8] sm:$0xff]  ;;  %v900_v8 = vpack.c.bf16 %v383_v5, %v381_v3  ;;  %v387_v11 = vld [vmem:[#allocation8 + $0x1d0] sm:$0xff]  ;;  %v1148_v3 = vmov 1966171168   ;;  %v261_v5 = vlaneseq }
  0x77   :  { %843 = vmatprep.subr.bf16.mxu0 %v842_v45  ;;  %v367_v45 = vld [vmem:[#allocation8 + $0x130] sm:$0xff]  ;;  %v390_v12 = vld [vmem:[#allocation8 + $0x1e8] sm:$0xff] }
  0x78   :  { %v884_v46 = vpack.c.bf16 %v367_v45, %v365_v44  ;;  %v391_v17 = vld [vmem:[#allocation8 + $0x1f0] sm:$0xff] }
  0x7a   :  { %845 = vmatpush1.bf16.msra.mxu0 %v844_v48  ;;  %v372_v48 = vld [vmem:[#allocation8 + $0x158] sm:$0xff] }
  0x7d   :  { %195 = vmatmul.mubr.f32.vlgmr.msra.gmra.mrb[0].mxu0 %v96_v49  ;;  %v886_v49 = vpack.c.bf16 %v372_v48, %v370_v47 }
  0x7e   :  { %200 = vmatprep.mubr.f32.mxu0 %v1147_v0  ;;  %v340_v0 = vld [vmem:[#allocation8 + $0x58] sm:$0xff] }
  0x7f   :  { %v854_v1 = vpack.c.bf16 %v340_v0, %v338_v63  ;;  %v379_v63 = vld [vmem:[#allocation8 + $0x190] sm:$0xff] }
  0x80   :  { %v896_v0 = vpack.c.bf16 %v379_v63, %v377_v62 }
  0x81   :  { %201 = vmatmul.mubr.f32.gmra.mrb[2].mxu0 %v97_v50  ;;  %855 = vmatprep.subr.bf16.mxu1 %v854_v1  ;;  %v369_v50 = vld [vmem:[#allocation8 + $0x140] sm:$0xff]  ;;  %v382_v1 = vld [vmem:[#allocation8 + $0x1a8] sm:$0xff] }
  0x82   :  { %857 = vmatpush1.bf16.msra.mxu1 %v856_v4  ;;  %v888_v52 = vpack.c.bf16 %v371_v51, %v369_v50  ;;  %v898_v4 = vpack.c.bf16 %v384_v2, %v382_v1 }
  0x83   :  { %859 = vmatprep.subr.bf16.mxu1 %v858_v7  ;;  %v388_v7 = vld [vmem:[#allocation8 + $0x1d8] sm:$0xff] }
  0x84   :  { %v902_v9 = vpack.c.bf16 %v388_v7, %v386_v6  ;;  %v262_v7 = vshrl.u32 %v261_v5, 7  ;;  %v610_v5 = vld [vmem:[#allocation10 + $0x90] sm:$0xff] }
  0x86   :  { %861 = vmatpush1.bf16.msra.mxu1 %v860_v10  ;;  %v385_v10 = vld [vmem:[#allocation8 + $0x1c0] sm:$0xff] }
  0x87   :  { %863 = vmatprep.subr.bf16.mxu1 %v862_v13  ;;  %v392_v13 = vld [vmem:[#allocation8 + $0x1f8] sm:$0xff]  ;;  %v904_v14 = vpack.c.bf16 %v387_v11, %v385_v10 }
  0x88   :  { %v906_v15 = vpack.c.bf16 %v392_v13, %v390_v12  ;;  %v207_v13 = vld [vmem:[%s1332_s2] sm:$0x3] }
  0x8a   :  { %865 = vmatpush1.bf16.msra.mxu1 %v864_v16  ;;  %v389_v16 = vld [vmem:[#allocation8 + $0x1e0] sm:$0xff] }
  0x8b   :  { %867 = vmatprep.subr.bf16.mxu1 %v866_v19  ;;  %v908_v18 = vpack.c.bf16 %v391_v17, %v389_v16  ;;  %v1290_v16 = vsub.s32 1, %v262_v7 }
  0x8e   :  { %869 = vmatpush1.bf16.msra.mxu1 %v868_v22 }
  0x8f   :  { %871 = vmatprep.subr.bf16.mxu1 %v870_v25 }
  0x92   :  { %873 = vmatpush1.bf16.msra.mxu1 %v872_v28 }
  0x93   :  { %875 = vmatprep.subr.bf16.mxu1 %v874_v31 }
  0x96   :  { %877 = vmatpush1.bf16.msra.mxu1 %v876_v34 }
  0x97   :  { %879 = vmatprep.subr.bf16.mxu1 %v878_v37 }
  0x9a   :  { %881 = vmatpush1.bf16.msra.mxu1 %v880_v40 }
  0x9b   :  { %883 = vmatprep.subr.bf16.mxu1 %v882_v43 }
  0x9e   :  { %885 = vmatpush1.bf16.msra.mxu1 %v884_v46 }
  0x9f   :  { %887 = vmatprep.subr.bf16.mxu1 %v886_v49 }
  0xa2   :  { %889 = vmatpush1.bf16.msra.mxu1 %v888_v52 }
  0xa3   :  { %891 = vmatprep.subr.bf16.mxu1 %v890_v55 }
  0xa6   :  { %893 = vmatpush1.bf16.msra.mxu1 %v892_v58 }
  0xa7   :  { %895 = vmatprep.subr.bf16.mxu1 %v894_v61 }
  0xaa   :  { %897 = vmatpush1.bf16.msra.mxu1 %v896_v0 }
  0xab   :  { %899 = vmatprep.subr.bf16.mxu1 %v898_v4  ;;  %v259_v4 = vunpack.c.l.s4 %v1148_v3 }
  0xad   :  { %v260_v6 = vunpack.c.0.s8 %v259_v4  ;;  %v608_v4 = vld [vmem:[#allocation10 + $0x80] sm:$0xff] }
  0xae   :  { %901 = vmatpush1.bf16.msra.mxu1 %v900_v8 }
  0xaf   :  { %903 = vmatprep.subr.bf16.mxu1 %v902_v9  ;;  %v1281_v9 = vsub.s32 %v260_v6, %v262_v7  ;;  %v928_v6 = vpack.c.bf16 %v610_v5, %v608_v4  ;;  %v650_v4 = vld [vmem:[#allocation10 + $0x1d0] sm:$0xff] }
  0xb2   :  { %905 = vmatpush1.bf16.msra.mxu1 %v904_v14 }
  0xb3   :  { %907 = vmatprep.subr.bf16.mxu1 %v906_v15  ;;  %v1288_v15 = vsub.s32 0, %v262_v7  ;;  %v613_v7 = vld [vmem:[#allocation10 + $0xa8] sm:$0xff] }
  0xb6   :  { %909 = vmatpush1.bf16.msra.mxu1 %v908_v18 }
 0x150   :  { %v1266_v19 = vpop.f32.mrb[0].mxu0 }
 0x151   :  { %v1268_v20 = vpop.f32.mrb[1].mxu0  ;;  %v223_v22 = vmul.f32 %v1266_v19, %v1266_v19 }
 0x152   :  { %v224_v26 = vmul.f32 %v1268_v20, %v1268_v20 }
 0x154   :  { %v1270_v21 = vpop.f32.mrb[2].mxu0 }
 0x155   :  { %v209_v23 = vadd.f32 %v1270_v21, %v1266_v19  ;;  %v225_v24 = vmul.f32 %v1270_v21, %v1270_v21  ;;  %v204_v25 = vpop.f32.mrb[3].mxu0 }
 0x156   :  { %v216_v27 = vadd.f32 %v204_v25, %v1268_v20  ;;  %v226_v28 = vmul.f32 %v204_v25, %v204_v25 }
 0x157   :  { %v210_v29 = vrot.slane %v209_v23, 4  ;;  %v227_v30 = vadd.f32 %v225_v24, %v223_v22 }
 0x158   :  { %v217_v31 = vrot.slane %v216_v27, 4  ;;  %v234_v32 = vadd.f32 %v226_v28, %v224_v26 }
 0x159   :  { %v211_v33 = vadd.f32 %v210_v29, %v209_v23  ;;  %v228_v34 = vrot.slane %v227_v30, 4 }
 0x15a   :  { %v218_v35 = vadd.f32 %v217_v31, %v216_v27  ;;  %v235_v36 = vrot.slane %v234_v32, 4 }
 0x15b   :  { %v212_v37 = vrot.slane %v211_v33, 2  ;;  %v229_v38 = vadd.f32 %v228_v34, %v227_v30 }
 0x15c   :  { %v219_v39 = vrot.slane %v218_v35, 2  ;;  %v236_v40 = vadd.f32 %v235_v36, %v234_v32  ;;  %v208_v32 = vld [vmem:[#allocation7] sm:$0x3] }
 0x15d   :  { %v213_v41 = vadd.f32 %v212_v37, %v211_v33  ;;  %v230_v42 = vrot.slane %v229_v38, 2 }
 0x15e   :  { %v220_v43 = vadd.f32 %v219_v39, %v218_v35  ;;  %v237_v44 = vrot.slane %v236_v40, 2 }
 0x15f   :  { %v214_v45 = vrot.slane %v213_v41, 1  ;;  %v231_v46 = vadd.f32 %v230_v42, %v229_v38  ;;  %v595_v42 = vld [vmem:[#allocation10 + $0x18] sm:$0xff] }
 0x160   :  { %v221_v47 = vrot.slane %v220_v43, 1  ;;  %v238_v48 = vadd.f32 %v237_v44, %v236_v40  ;;  %v592_v44 = vld [vmem:[#allocation10] sm:$0xff] }
 0x161   :  { %v215_v49 = vadd.f32 %v214_v45, %v213_v41  ;;  %v232_v50 = vrot.slane %v231_v46, 1  ;;  %v593_v41 = vld [vmem:[#allocation10 + $0x8] sm:$0xff]  ;;  %v594_v45 = vld [vmem:[#allocation10 + $0x10] sm:$0xff] }
 0x162   :  { %v222_v51 = vadd.f32 %v221_v47, %v220_v43  ;;  %v239_v52 = vrot.slane %v238_v48, 1  ;;  %v910_v43 = vpack.c.bf16 %v595_v42, %v593_v41  ;;  %v597_v47 = vld [vmem:[#allocation10 + $0x28] sm:$0xff]  ;;  %v635_v41 = vld [vmem:[#allocation10 + $0x158] sm:$0xff] }
 0x163   :  { %v233_v53 = vadd.f32 %v232_v50, %v231_v46  ;;  %v241_v54 = vmul.f32 0.0625, %v215_v49  ;;  %v912_v46 = vpack.c.bf16 %v594_v45, %v592_v44  ;;  %v596_v50 = vld [vmem:[#allocation10 + $0x20] sm:$0xff]  ;;  %v634_v44 = vld [vmem:[#allocation10 + $0x150] sm:$0xff] }
 0x164   :  { %v240_v55 = vadd.f32 %v239_v52, %v238_v48  ;;  %v242_v56 = vmul.f32 0.0625, %v222_v51  ;;  %911 = vmatprep.subr.bf16.mxu0 %v910_v43  ;;  %v599_v48 = vld [vmem:[#allocation10 + $0x38] sm:$0xff]  ;;  %v598_v51 = vld [vmem:[#allocation10 + $0x30] sm:$0xff]  ;;  %v632_v43 = vld [vmem:[#allocation10 + $0x140] sm:$0xff] }
 0x165   :  { %v243_v57 = vmul.f32 0.0625, %v233_v53  ;;  %v245_v58 = vmul.f32 %v241_v54, %v241_v54  ;;  %913 = vmatpush1.bf16.msra.mxu0 %v912_v46  ;;  %v914_v49 = vpack.c.bf16 %v599_v48, %v597_v47  ;;  %v916_v52 = vpack.c.bf16 %v598_v51, %v596_v50  ;;  %v601_v53 = vld [vmem:[#allocation10 + $0x48] sm:$0xff]  ;;  %v639_v47 = vld [vmem:[#allocation10 + $0x178] sm:$0xff]  ;;  %v638_v50 = vld [vmem:[#allocation10 + $0x170] sm:$0xff] }
 0x166   :  { %v244_v59 = vmul.f32 0.0625, %v240_v55  ;;  %v246_v60 = vmul.f32 %v242_v56, %v242_v56  ;;  %v952_v45 = vpack.c.bf16 %v634_v44, %v632_v43  ;;  %v637_v46 = vld [vmem:[#allocation10 + $0x168] sm:$0xff] }
 0x167   :  { %v247_v61 = vsub.f32 %v243_v57, %v245_v58  ;;  %915 = vmatprep.subr.bf16.mxu0 %v914_v49  ;;  %v602_v57 = vld [vmem:[#allocation10 + $0x50] sm:$0xff]  ;;  %v954_v48 = vpack.c.bf16 %v639_v47, %v637_v46  ;;  %v636_v49 = vld [vmem:[#allocation10 + $0x160] sm:$0xff] }
 0x168   :  { %v248_v62 = vsub.f32 %v244_v59, %v246_v60  ;;  %v605_v59 = vld [vmem:[#allocation10 + $0x68] sm:$0xff]  ;;  %v607_v60 = vld [vmem:[#allocation10 + $0x78] sm:$0xff]  ;;  %v956_v51 = vpack.c.bf16 %v638_v50, %v636_v49 }
 0x169   :  { %v249_v63 = vmax.f32 %v247_v61, 0.0  ;;  %917 = vmatpush1.bf16.msra.mxu0 %v916_v52  ;;  %v922_v61 = vpack.c.bf16 %v607_v60, %v605_v59  ;;  %v641_v52 = vld [vmem:[#allocation10 + $0x188] sm:$0xff]  ;;  %v647_v59 = vld [vmem:[#allocation10 + $0x1b8] sm:$0xff] }
 0x16a   :  { %v250_v0 = vmax.f32 %v248_v62, 0.0  ;;  %v604_v62 = vld [vmem:[#allocation10 + $0x60] sm:$0xff] }
 0x16b   :  { %v251_v1 = vadd.f32 1e-05, %v249_v63  ;;  %v606_v63 = vld [vmem:[#allocation10 + $0x70] sm:$0xff] }
 0x16c   :  { %v252_v2 = vadd.f32 1e-05, %v250_v0  ;;  %v924_v0 = vpack.c.bf16 %v606_v63, %v604_v62  ;;  %v646_v62 = vld [vmem:[#allocation10 + $0x1b0] sm:$0xff] }
 0x16d   :  { %986 = vrsqrt.f32 %v251_v1  ;;  %v609_v1 = vld [vmem:[#allocation10 + $0x88] sm:$0xff] }
 0x16e   :  { %988 = vrsqrt.f32 %v252_v2  ;;  %v611_v2 = vld [vmem:[#allocation10 + $0x98] sm:$0xff] }
 0x16f   :  { %v926_v3 = vpack.c.bf16 %v611_v2, %v609_v1  ;;  %v651_v1 = vld [vmem:[#allocation10 + $0x1d8] sm:$0xff] }
 0x177   :  { %v987_v8 = vpop.eup %986 }
 0x178   :  { %v989_v10 = vpop.eup %988 }
 0x179   :  { %v257_v11 = vcombine.low %v987_v8, %v989_v10  ;;  %v615_v8 = vld [vmem:[#allocation10 + $0xb8] sm:$0xff] }
 0x17a   :  { %v930_v10 = vpack.c.bf16 %v615_v8, %v613_v7  ;;  %v655_v7 = vld [vmem:[#allocation10 + $0x1f8] sm:$0xff] }
 0x17b   :  { %v264_v12 = vrot.slane %v257_v11, %v1281_v9  ;;  %v612_v11 = vld [vmem:[#allocation10 + $0xa0] sm:$0xff] }
 0x17d   :  { %v271_v14 = vrot.slane %v264_v12, %v1281_v9  ;;  %v614_v12 = vld [vmem:[#allocation10 + $0xb0] sm:$0xff] }
 0x17f   :  { %v273_v17 = vmul.f32 %v271_v14, %v207_v13  ;;  %v932_v13 = vpack.c.bf16 %v614_v12, %v612_v11  ;;  %v617_v14 = vld [vmem:[#allocation10 + $0xc8] sm:$0xff]  ;;  %v654_v11 = vld [vmem:[#allocation10 + $0x1f0] sm:$0xff] }
 0x181   :  { %v278_v18 = vrot.slane %v273_v17, %v1288_v15  ;;  %v282_v22 = vrot.slane %v273_v17, %v1290_v16  ;;  %v619_v17 = vld [vmem:[#allocation10 + $0xd8] sm:$0xff] }
 0x183   :  { %v286_v23 = vmul.f32 %v282_v22, %v242_v56  ;;  %v309_v24 = vmul.f32 %v282_v22, %v204_v25  ;;  %v285_v26 = vmul.f32 %v278_v18, %v241_v54  ;;  %v307_v27 = vmul.f32 %v282_v22, %v1268_v20  ;;  %v603_v54 = vld [vmem:[#allocation10 + $0x58] sm:$0xff]  ;;  %v600_v56 = vld [vmem:[#allocation10 + $0x40] sm:$0xff] }
 0x184   :  { %v306_v28 = vmul.f32 %v278_v18, %v1266_v19  ;;  %v308_v29 = vmul.f32 %v278_v18, %v1270_v21  ;;  %v918_v55 = vpack.c.bf16 %v603_v54, %v601_v53  ;;  %v920_v58 = vpack.c.bf16 %v602_v57, %v600_v56  ;;  %v616_v22 = vld [vmem:[#allocation10 + $0xc0] sm:$0xff]  ;;  %v643_v53 = vld [vmem:[#allocation10 + $0x198] sm:$0xff]  ;;  %v642_v56 = vld [vmem:[#allocation10 + $0x190] sm:$0xff] }
 0x185   :  { %v289_v30 = vcombine.low %v285_v26, %v286_v23  ;;  %v934_v18 = vpack.c.bf16 %v619_v17, %v617_v14  ;;  %v618_v23 = vld [vmem:[#allocation10 + $0xd0] sm:$0xff]  ;;  %v621_v26 = vld [vmem:[#allocation10 + $0xe8] sm:$0xff]  ;;  %v958_v54 = vpack.c.bf16 %v643_v53, %v641_v52 }
 0x186   :  { %919 = vmatprep.subr.bf16.mxu0 %v918_v55  ;;  %v640_v55 = vld [vmem:[#allocation10 + $0x180] sm:$0xff] }
 0x187   :  { %v296_v31 = vrot.slane %v289_v30, %v1281_v9  ;;  %921 = vmatpush1.bf16.msra.mxu0 %v920_v58  ;;  %v622_v30 = vld [vmem:[#allocation10 + $0xf0] sm:$0xff]  ;;  %v960_v57 = vpack.c.bf16 %v642_v56, %v640_v55  ;;  %v645_v58 = vld [vmem:[#allocation10 + $0x1a8] sm:$0xff] }
 0x188   :  { %923 = vmatprep.subr.bf16.mxu0 %v922_v61  ;;  %v962_v60 = vpack.c.bf16 %v647_v59, %v645_v58  ;;  %v644_v61 = vld [vmem:[#allocation10 + $0x1a0] sm:$0xff] }
 0x189   :  { %v303_v33 = vrot.slane %v296_v31, %v1281_v9  ;;  %v964_v63 = vpack.c.bf16 %v646_v62, %v644_v61 }
 0x18b   :  { %v305_v34 = vsub.f32 %v208_v32, %v303_v33  ;;  %925 = vmatpush1.bf16.msra.mxu0 %v924_v0  ;;  %v625_v32 = vld [vmem:[#allocation10 + $0x108] sm:$0xff]  ;;  %v627_v33 = vld [vmem:[#allocation10 + $0x118] sm:$0xff] }
 0x18c   :  { %927 = vmatprep.subr.bf16.mxu0 %v926_v3  ;;  %v649_v0 = vld [vmem:[#allocation10 + $0x1c8] sm:$0xff]  ;;  %v648_v3 = vld [vmem:[#allocation10 + $0x1c0] sm:$0xff] }
 0x18d   :  { %v318_v35 = vrot.slane %v305_v34, %v1290_v16  ;;  %v314_v36 = vrot.slane %v305_v34, %v1288_v15  ;;  %v942_v34 = vpack.c.bf16 %v627_v33, %v625_v32  ;;  %v966_v2 = vpack.c.bf16 %v651_v1, %v649_v0 }
 0x18e   :  { %v968_v5 = vpack.c.bf16 %v650_v4, %v648_v3  ;;  %v470_v3 = vld [vmem:[%s1335_s5] sm:$0x3]  ;;  %s1149_s5 = smov [#allocation11]  }
 0x18f   :  { %v322_v37 = vadd.f32 %v318_v35, %v307_v27  ;;  %v321_v25 = vadd.f32 %v314_v36, %v306_v28  ;;  %v324_v38 = vadd.f32 %v318_v35, %v309_v24  ;;  %v323_v39 = vadd.f32 %v314_v36, %v308_v29  ;;  %929 = vmatpush1.bf16.msra.mxu0 %v928_v6  ;;  %v623_v27 = vld [vmem:[#allocation10 + $0xf8] sm:$0xff]  ;;  %v620_v29 = vld [vmem:[#allocation10 + $0xe0] sm:$0xff]  ;;  %v626_v36 = vld [vmem:[#allocation10 + $0x110] sm:$0xff] }
 0x190   :  { %931 = vmatprep.subr.bf16.mxu0 %v930_v10  ;;  %v936_v24 = vpack.c.bf16 %v618_v23, %v616_v22  ;;  %v938_v28 = vpack.c.bf16 %v623_v27, %v621_v26  ;;  %v940_v31 = vpack.c.bf16 %v622_v30, %v620_v29  ;;  %v624_v35 = vld [vmem:[#allocation10 + $0x100] sm:$0xff]  ;;  %v653_v6 = vld [vmem:[#allocation10 + $0x1e8] sm:$0xff] }
 0x191   :  { %v326_v20 = vmax.f32 %v322_v37, 0.0  ;;  %v325_v40 = vmax.f32 %v321_v25, 0.0  ;;  %v328_v19 = vmax.f32 %v324_v38, 0.0  ;;  %v327_v21 = vmax.f32 %v323_v39, 0.0  ;;  %v629_v25 = vld [vmem:[#allocation10 + $0x128] sm:$0xff]  ;;  %v631_v38 = vld [vmem:[#allocation10 + $0x138] sm:$0xff] }
 0x192   :  { %v944_v37 = vpack.c.bf16 %v626_v36, %v624_v35  ;;  %v946_v39 = vpack.c.bf16 %v631_v38, %v629_v25  ;;  %v970_v8 = vpack.c.bf16 %v655_v7, %v653_v6  ;;  %v652_v10 = vld [vmem:[#allocation10 + $0x1e0] sm:$0xff] }
 0x193   :  { %457 = vmatprep.mubr.f32.mxu1 %v326_v20  ;;  %933 = vmatpush1.bf16.msra.mxu0 %v932_v13  ;;  %v628_v20 = vld [vmem:[#allocation10 + $0x120] sm:$0xff]  ;;  %v972_v12 = vpack.c.bf16 %v654_v11, %v652_v10 }
 0x194   :  { %458 = vmatmul.mubr.f32.vlgmr.msra.gmra.mrb[0].mxu1 %v325_v40  ;;  %935 = vmatprep.subr.bf16.mxu0 %v934_v18  ;;  %v630_v40 = vld [vmem:[#allocation10 + $0x130] sm:$0xff] }
 0x195   :  { %463 = vmatprep.mubr.f32.mxu1 %v328_v19  ;;  %v948_v19 = vpack.c.bf16 %v630_v40, %v628_v20 }
 0x197   :  { %937 = vmatpush1.bf16.msra.mxu0 %v936_v24 }
 0x198   :  { %464 = vmatmul.mubr.f32.gmra.mrb[2].mxu1 %v327_v21  ;;  %939 = vmatprep.subr.bf16.mxu0 %v938_v28  ;;  %v633_v21 = vld [vmem:[#allocation10 + $0x148] sm:$0xff] }
 0x199   :  { %v950_v42 = vpack.c.bf16 %v635_v41, %v633_v21 }
 0x19b   :  { %941 = vmatpush1.bf16.msra.mxu0 %v940_v31 }
 0x19c   :  { %943 = vmatprep.subr.bf16.mxu0 %v942_v34 }
 0x19f   :  { %945 = vmatpush1.bf16.msra.mxu0 %v944_v37 }
 0x1a0   :  { %947 = vmatprep.subr.bf16.mxu0 %v946_v39 }
 0x1a3   :  { %949 = vmatpush1.bf16.msra.mxu0 %v948_v19 }
 0x1a4   :  { %951 = vmatprep.subr.bf16.mxu0 %v950_v42 }
 0x1a7   :  { %953 = vmatpush1.bf16.msra.mxu0 %v952_v45 }
 0x1a8   :  { %955 = vmatprep.subr.bf16.mxu0 %v954_v48 }
 0x1ab   :  { %957 = vmatpush1.bf16.msra.mxu0 %v956_v51 }
 0x1ac   :  { %959 = vmatprep.subr.bf16.mxu0 %v958_v54 }
 0x1af   :  { %961 = vmatpush1.bf16.msra.mxu0 %v960_v57 }
 0x1b0   :  { %963 = vmatprep.subr.bf16.mxu0 %v962_v60 }
 0x1b3   :  { %965 = vmatpush1.bf16.msra.mxu0 %v964_v63 }
 0x1b4   :  { %967 = vmatprep.subr.bf16.mxu0 %v966_v2 }
 0x1b7   :  { %969 = vmatpush1.bf16.msra.mxu0 %v968_v5 }
 0x1b8   :  { %971 = vmatprep.subr.bf16.mxu0 %v970_v8 }
 0x1bb   :  { %973 = vmatpush1.bf16.msra.mxu0 %v972_v12 }
 0x267   :  { %v459_v13 = vpop.f32.mrb[0].mxu1 }
 0x268   :  { %v461_v14 = vpop.f32.mrb[1].mxu1  ;;  %v486_v18 = vmul.f32 %v459_v13, %v459_v13 }
 0x269   :  { %v487_v26 = vmul.f32 %v461_v14, %v461_v14 }
 0x26b   :  { %v465_v17 = vpop.f32.mrb[2].mxu1 }
 0x26c   :  { %v472_v22 = vadd.f32 %v465_v17, %v459_v13  ;;  %v488_v23 = vmul.f32 %v465_v17, %v465_v17  ;;  %v467_v24 = vpop.f32.mrb[3].mxu1 }
 0x26d   :  { %v479_v27 = vadd.f32 %v467_v24, %v461_v14  ;;  %v489_v28 = vmul.f32 %v467_v24, %v467_v24 }
 0x26e   :  { %v473_v29 = vrot.slane %v472_v22, 4  ;;  %v490_v30 = vadd.f32 %v488_v23, %v486_v18 }
 0x26f   :  { %v480_v31 = vrot.slane %v479_v27, 4  ;;  %v497_v32 = vadd.f32 %v489_v28, %v487_v26 }
 0x270   :  { %v474_v33 = vadd.f32 %v473_v29, %v472_v22  ;;  %v491_v34 = vrot.slane %v490_v30, 4 }
 0x271   :  { %v481_v35 = vadd.f32 %v480_v31, %v479_v27  ;;  %v498_v36 = vrot.slane %v497_v32, 4  ;;  %v471_v27 = vld [vmem:[%s1336_s6] sm:$0x3]  ;;  %s800_s6 = sshll.u32 %s1149_s5, 4  ;;  %s801_s6 = int_to_ptr.vmem [resolvable:$true] %s800_s6 }
 0x272   :  { %v475_v37 = vrot.slane %v474_v33, 2  ;;  %v492_v25 = vadd.f32 %v491_v34, %v490_v30  ;;  %s1108_s29 = scalar_lea.vmem %s801_s6, 512  ;;  %p1113_p13 = scmp.lt.s32.totalorder %s801_s6, %s801_s6 }
 0x273   :  { %v482_v38 = vrot.slane %v481_v35, 2  ;;  %v499_v39 = vadd.f32 %v498_v36, %v497_v32  ;;  %p1109_p12 = scmp.ne.s32.totalorder %s801_s6, %s1108_s29  ;;  %p1114_p0 = scmp.lt.s32.totalorder %s1108_s29, %s1108_s29 }
 0x274   :  { %v476_v20 = vadd.f32 %v475_v37, %v474_v33  ;;  %v493_v40 = vrot.slane %v492_v25, 2 }
 0x275   :  { %v483_v19 = vadd.f32 %v482_v38, %v481_v35  ;;  %v500_v21 = vrot.slane %v499_v39, 2  ;;  %p1115_p1 = por %p1114_p0, %p1113_p13 }
 0x276   :  { %v477_v41 = vrot.slane %v476_v20, 1  ;;  %v494_v42 = vadd.f32 %v493_v40, %v492_v25 }
 0x277   :  { %v484_v43 = vrot.slane %v483_v19, 1  ;;  %v501_v44 = vadd.f32 %v500_v21, %v499_v39  ;;  %p1116_p2 = pnand %p1115_p1, %p1109_p12 }
 0x278   :  { %v478_v45 = vadd.f32 %v477_v41, %v476_v20  ;;  %v495_v46 = vrot.slane %v494_v42, 1 }
 0x279   :  { %v485_v47 = vadd.f32 %v484_v43, %v483_v19  ;;  %v502_v48 = vrot.slane %v501_v44, 1 }
 0x27a   :  { %v496_v49 = vadd.f32 %v495_v46, %v494_v42  ;;  %v504_v50 = vmul.f32 0.0625, %v478_v45 }
 0x27b   :  { %v503_v51 = vadd.f32 %v502_v48, %v501_v44  ;;  %v505_v52 = vmul.f32 0.0625, %v485_v47 }
 0x27c   :  { %v506_v53 = vmul.f32 0.0625, %v496_v49  ;;  %v508_v54 = vmul.f32 %v504_v50, %v504_v50 }
 0x27d   :  { %v507_v55 = vmul.f32 0.0625, %v503_v51  ;;  %v509_v56 = vmul.f32 %v505_v52, %v505_v52 }
 0x27e   :  { %v510_v57 = vsub.f32 %v506_v53, %v508_v54 }
 0x27f   :  { %v511_v58 = vsub.f32 %v507_v55, %v509_v56 }
 0x280   :  { %v512_v59 = vmax.f32 %v510_v57, 0.0 }
 0x281   :  { %v513_v60 = vmax.f32 %v511_v58, 0.0 }
 0x282   :  { %v514_v61 = vadd.f32 1e-05, %v512_v59 }
 0x283   :  { %v515_v62 = vadd.f32 1e-05, %v513_v60 }
 0x284   :  { %990 = vrsqrt.f32 %v514_v61 }
 0x285   :  { %992 = vrsqrt.f32 %v515_v62 }
 0x28e   :  { %v991_v63 = vpop.eup %990 }
 0x28f   :  { %v993_v0 = vpop.eup %992 }
 0x290   :  { %v520_v1 = vcombine.low %v991_v63, %v993_v0 }
 0x292   :  { %v527_v2 = vrot.slane %v520_v1, %v1281_v9 }
 0x294   :  { %v534_v4 = vrot.slane %v527_v2, %v1281_v9 }
 0x296   :  { %v536_v5 = vmul.f32 %v534_v4, %v470_v3 }
 0x298   :  { %v541_v6 = vrot.slane %v536_v5, %v1288_v15  ;;  %v545_v7 = vrot.slane %v536_v5, %v1290_v16 }
 0x29a   :  { %v548_v8 = vmul.f32 %v541_v6, %v504_v50  ;;  %v549_v10 = vmul.f32 %v545_v7, %v505_v52  ;;  %v569_v11 = vmul.f32 %v541_v6, %v459_v13  ;;  %v572_v12 = vmul.f32 %v545_v7, %v467_v24 }
 0x29b   :  { %v570_v18 = vmul.f32 %v545_v7, %v461_v14  ;;  %v571_v22 = vmul.f32 %v541_v6, %v465_v17 }
 0x29c   :  { %v552_v23 = vcombine.low %v548_v8, %v549_v10 }
 0x29e   :  { %v559_v26 = vrot.slane %v552_v23, %v1281_v9 }
 0x2a0   :  { %v566_v28 = vrot.slane %v559_v26, %v1281_v9 }
 0x2a2   :  { %v568_v29 = vsub.f32 %v471_v27, %v566_v28 }
 0x2a4   :  { %v577_v30 = vrot.slane %v568_v29, %v1288_v15  ;;  %v581_v31 = vrot.slane %v568_v29, %v1290_v16 }
 0x2a6   :  { %v584_v32 = vadd.f32 %v577_v30, %v569_v11  ;;  %v587_v33 = vadd.f32 %v581_v31, %v572_v12  ;;  %v585_v13 = vadd.f32 %v581_v31, %v570_v18  ;;  %v586_v24 = vadd.f32 %v577_v30, %v571_v22 }
 0x2a8   :  { %v589_v14 = vmax.f32 %v585_v13, 0.0  ;;  %v588_v17 = vmax.f32 %v584_v32, 0.0  ;;  %v591_v34 = vmax.f32 %v587_v33, 0.0  ;;  %v590_v35 = vmax.f32 %v586_v24, 0.0 }
 0x2aa   :  { %720 = vmatprep.mubr.f32.mxu0 %v589_v14 }
 0x2ab   :  { %721 = vmatmul.mubr.f32.vlgmr.msra.gmra.mrb[4].mxu0 %v588_v17 }
 0x2ac   :  { %726 = vmatprep.mubr.f32.mxu0 %v591_v34 }
 0x2af   :  { %727 = vmatmul.mubr.f32.gmra.mrb[6].mxu0 %v590_v35 }
 0x37e   :  { %v722_v36 = vpop.f32.mrb[4].mxu0 }
 0x37f   :  { %v724_v37 = vpop.f32.mrb[5].mxu0  ;;  %v747_v25 = vmul.f32 %v722_v36, %v722_v36 }
 0x380   :  { %v748_v16 = vmul.f32 %v724_v37, %v724_v37 }
 0x382   :  { %v728_v9 = vpop.f32.mrb[6].mxu0 }
 0x383   :  { %v733_v38 = vadd.f32 %v728_v9, %v722_v36  ;;  %v749_v15 = vmul.f32 %v728_v9, %v728_v9  ;;  %v730_v39 = vpop.f32.mrb[7].mxu0 }
 0x384   :  { %v740_v20 = vadd.f32 %v730_v39, %v724_v37  ;;  %v750_v40 = vmul.f32 %v730_v39, %v730_v39 }
 0x385   :  { %v734_v19 = vrot.slane %v733_v38, 4  ;;  %v751_v21 = vadd.f32 %v749_v15, %v747_v25 }
 0x386   :  { %v741_v41 = vrot.slane %v740_v20, 4  ;;  %v758_v42 = vadd.f32 %v750_v40, %v748_v16 }
 0x387   :  { %v735_v43 = vadd.f32 %v734_v19, %v733_v38  ;;  %v752_v44 = vrot.slane %v751_v21, 4 }
 0x388   :  { %v742_v45 = vadd.f32 %v741_v41, %v740_v20  ;;  %v759_v46 = vrot.slane %v758_v42, 4 }
 0x389   :  { %v736_v47 = vrot.slane %v735_v43, 2  ;;  %v753_v48 = vadd.f32 %v752_v44, %v751_v21 }
 0x38a   :  { %v743_v49 = vrot.slane %v742_v45, 2  ;;  %v760_v50 = vadd.f32 %v759_v46, %v758_v42 }
 0x38b   :  { %v737_v51 = vadd.f32 %v736_v47, %v735_v43  ;;  %v754_v52 = vrot.slane %v753_v48, 2 }
 0x38c   :  { %v744_v53 = vadd.f32 %v743_v49, %v742_v45  ;;  %v761_v54 = vrot.slane %v760_v50, 2 }
 0x38d   :  { %v738_v55 = vrot.slane %v737_v51, 1  ;;  %v755_v56 = vadd.f32 %v754_v52, %v753_v48 }
 0x38e   :  { %v745_v57 = vrot.slane %v744_v53, 1  ;;  %v762_v58 = vadd.f32 %v761_v54, %v760_v50 }
 0x38f   :  { %v739_v59 = vadd.f32 %v738_v55, %v737_v51  ;;  %v756_v60 = vrot.slane %v755_v56, 1 }
 0x390   :  { %v746_v61 = vadd.f32 %v745_v57, %v744_v53  ;;  %v763_v62 = vrot.slane %v762_v58, 1 }
 0x391   :  { %v757_v63 = vadd.f32 %v756_v60, %v755_v56  ;;  %v765_v0 = vmul.f32 0.0625, %v739_v59 }
 0x392   :  { %v764_v1 = vadd.f32 %v763_v62, %v762_v58  ;;  %v766_v2 = vmul.f32 0.0625, %v746_v61 }
 0x393   :  { %v767_v3 = vmul.f32 0.0625, %v757_v63  ;;  %v769_v4 = vmul.f32 %v765_v0, %v765_v0 }
 0x394   :  { %v768_v5 = vmul.f32 0.0625, %v764_v1  ;;  %v770_v6 = vmul.f32 %v766_v2, %v766_v2 }
 0x395   :  { %v771_v7 = vsub.f32 %v767_v3, %v769_v4 }
 0x396   :  { %v772_v8 = vsub.f32 %v768_v5, %v770_v6 }
 0x397   :  { %v773_v10 = vmax.f32 %v771_v7, 0.0 }
 0x398   :  { %v774_v11 = vmax.f32 %v772_v8, 0.0 }
 0x399   :  { %v775_v12 = vadd.f32 1e-05, %v773_v10 }
 0x39a   :  { %v776_v18 = vadd.f32 1e-05, %v774_v11 }
 0x39b   :  { %994 = vrsqrt.f32 %v775_v12 }
 0x39c   :  { %996 = vrsqrt.f32 %v776_v18 }
 0x3a5   :  { %v995_v22 = vpop.eup %994 }
 0x3a6   :  { %v997_v23 = vpop.eup %996  ;;  %v779_v26 = vmul.f32 %v995_v22, %v765_v0  ;;  %v783_v27 = vmul.f32 %v995_v22, %v722_v36  ;;  %v785_v28 = vmul.f32 %v995_v22, %v728_v9 }
 0x3a7   :  { %v780_v29 = vmul.f32 %v997_v23, %v766_v2  ;;  %v784_v30 = vmul.f32 %v997_v23, %v724_v37  ;;  %v786_v31 = vmul.f32 %v997_v23, %v730_v39 }
 0x3a8   :  { %v781_v32 = vsub.f32 0.0, %v779_v26 }
 0x3a9   :  { %v782_v33 = vsub.f32 0.0, %v780_v29 }
 0x3aa   :  { %v787_v13 = vadd.f32 %v783_v27, %v781_v32  ;;  %v789_v24 = vadd.f32 %v785_v28, %v781_v32 }
 0x3ab   :  { %v788_v14 = vadd.f32 %v784_v30, %v782_v33  ;;  %v790_v17 = vadd.f32 %v786_v31, %v782_v33 }
 0x3ac   :  { %793 = vst [vmem:[#allocation11 + $0x10] sm:$0xff] %v789_v24  ;;  %791 = vst [vmem:[#allocation11] sm:$0xff] %v787_v13 }
 0x3ad   :  { %794 = vst [vmem:[#allocation11 + $0x18] sm:$0xff] %v790_v17  ;;  %792 = vst [vmem:[#allocation11 + $0x8] sm:$0xff] %v788_v14 }
 0x3ae   :  { %1119 = shalt.err (!%p1116_p2)
}
 0x3af   :  { %s1120_s28 = scalar_lea.hbm %s1338_s8, 512 }
 0x3b0   :  { %p1121_p3 = scmp.ne.s32.totalorder %s1338_s8, %s1120_s28  ;;  %p1124_p4 = scmp.lt.u32.totalorder %s1120_s28, %s1338_s8 }
 0x3b2   :  { %p1126_p5 = pnand %p1124_p4, %p1121_p3 }
 0x3b4   :  { %1129 = shalt.err (!%p1126_p5)
}
 0x3b5   :  { %806 = dma.vmem_to_hbm [thread:$0]  %s801_s6, 512, %s1338_s8, [#allocation4], %s1139_s15, %s1139_s15, %s1140_s16  }
 0x3b6   :  { %1136 = dma.done.wait [#allocation4], 512  }
 0x3b7   :  { %1137 = vsyncadd [#allocation4], 4294966784 }
 0x3b8   :  { %810 = vsyncpa [#allocation3], 1 }
 0x3b9   :  { %811 = vsyncpa [#allocation6], 1 }
 0x3ba   :  { %812 = vsyncpa [#allocation9], 1 }
 0x3bb   :  { %813 = vsyncpa [#allocation4], 1 }

</bundles_post_ra>
